<compile_context>
chip_gen: v6e
topology: v6e:2x2x1
jax: 0.10.0
libtpu: 0.0.40
codegen_flags: <defaults>
</compile_context>

<pallas_src>
import jax
import jax.numpy as jnp
from jax.experimental import pallas as pl
from jax.experimental.pallas import tpu as pltpu


def _round_up(x, m):
    return ((x + m - 1) // m) * m


def _sigmoid_f32(x):
    # Mathematically identical to 1/(1+exp(-x)); one EUP tanh, no divide.
    return 0.5 * jnp.tanh(0.5 * x) + 0.5


def _vmem_capacity_bytes():
    """Physical per-TensorCore VMEM; conservative fallback if query fails."""
    try:
        info = pltpu.get_tpu_info()
        cap = getattr(info, "vmem_capacity_bytes", None)
        if cap:
            return int(cap)
    except Exception:
        pass
    return 64 * 2**20  # v7x per-TC VMEM (smallest of the targeted chips)


def _num_tensorcores():
    """2 on megacore / multi-TC chips (v4/v5p/v7x), else 1."""
    try:
        kind = jax.devices()[0].device_kind.lower()
    except Exception:
        return 1
    if "lite" in kind or "v5e" in kind or "v6" in kind:
        return 1
    if "v4" in kind or "v5p" in kind or "v7" in kind:
        return 2
    return 1


def disease_mlp_kernel(sw_ref,                       # [3]  f32  (SMEM, scalar prefetch)
                       h_ref,                        # [TM, H]  bf16
                       w1_ref, b1_ref,               # [H, H] bf16, [1, H]  f32
                       w2_ref, b2_ref,               # [H, H] bf16, [1, H]  f32
                       w3_ref, b3_ref,               # [H, Cp] bf16, [1, Cp] f32
                       out_ref):                     # [TM, Cp] f32
    sw12 = sw_ref[0]
    sw13 = sw_ref[1]
    sw23 = sw_ref[2]

    h_bf = h_ref[...]                                # bf16 (MXU operand as-is)
    h = h_bf.astype(jnp.float32)                     # f32 copy for skip math

    # layer 1 + sigmoid
    z1 = jnp.dot(h_bf, w1_ref[...],
                 preferred_element_type=jnp.float32) + b1_ref[...]
    h1 = _sigmoid_f32(z1)

    # layer 2 + skip(1->2) + sigmoid
    h2_in = h1 + sw12 * h
    z2 = jnp.dot(h2_in.astype(jnp.bfloat16), w2_ref[...],
                 preferred_element_type=jnp.float32) + b2_ref[...]
    h2 = _sigmoid_f32(z2)

    # final layer + skips(1->3, 2->3) + sigmoid
    fin = h2 + sw13 * h + sw23 * h1
    z3 = jnp.dot(fin.astype(jnp.bfloat16), w3_ref[...],
                 preferred_element_type=jnp.float32) + b3_ref[...]
    out_ref[...] = _sigmoid_f32(z3).astype(out_ref.dtype)


def _build_call(TM, n_pad, hdim, c_pad, vmem_limit, single_buffer_weights):
    """Construct the pallas_call for given tiling (weights resident in VMEM)."""

    def resident(shape):
        if single_buffer_weights:
            # Constant index_map -> block never refetched; 1 buffer suffices.
            return pl.BlockSpec(shape, lambda i, sw: (0, 0),
                                pipeline_mode=pl.Buffered(1))
        return pl.BlockSpec(shape, lambda i, sw: (0, 0))

    grid_spec = pltpu.PrefetchScalarGridSpec(
        num_scalar_prefetch=1,
        grid=(n_pad // TM,),
        in_specs=[
            pl.BlockSpec((TM, hdim), lambda i, sw: (i, 0)),   # h row tile (bf16)
            resident((hdim, hdim)),                           # w1
            resident((1, hdim)),                              # b1
            resident((hdim, hdim)),                           # w2
            resident((1, hdim)),                              # b2
            resident((hdim, c_pad)),                          # w3 (padded)
            resident((1, c_pad)),                             # b3 (padded)
        ],
        out_specs=pl.BlockSpec((TM, c_pad), lambda i, sw: (i, 0)),
    )

    return pl.pallas_call(
        disease_mlp_kernel,
        out_shape=jax.ShapeDtypeStruct((n_pad, c_pad), jnp.float32),
        grid_spec=grid_spec,
        compiler_params=pltpu.CompilerParams(
            dimension_semantics=("parallel",),   # megacore sharding on 2-TC chips
            vmem_limit_bytes=vmem_limit,
        ),
    )


def disease_mlp(h, params, *, tm_max=2048):
    """h: [N, hdim]. params: dict of weights ([in,out]), biases, skip scalars."""
    n, hdim = h.shape
    nclass = params["w3"].shape[1]

    # --- padding / tiling -----------------------------------------------------
    c_pad = _round_up(nclass, 128)                  # lane-dense final stores
    n8 = _round_up(max(n, 1), 8)

    vmem_cap = _vmem_capacity_bytes()
    vmem_budget = (vmem_cap * 3) // 4               # ~75% of physical VMEM

    # Resident bytes (single-buffered weights + biases).
    resident_bytes = (2 * hdim * hdim + hdim * c_pad) * 2 + (2 * hdim + c_pad) * 4
    # Per-row VMEM cost: double-buffered bf16 h tile, double-buffered f32 out
    # tile, plus generous headroom for f32 intermediates inside the kernel.
    per_row = (2 * hdim * 2) + (2 * c_pad * 4) + (6 * hdim * 4) + (2 * c_pad * 4)

    avail = vmem_budget - resident_bytes - (2 * 2**20)
    if avail < 8 * per_row:
        # TODO(synk): add a K-tiled accumulator fallback for very large hdim.
        raise ValueError(
            f"hdim={hdim} too large for the resident-weight strategy on this "
            f"chip (VMEM budget {vmem_budget} B).")
    tm_fit = max((avail // per_row) // 8 * 8, 8)

    num_tc = _num_tensorcores()
    TM = int(min(n8, tm_max, tm_fit))
    TM = _round_up(TM, 8)
    steps = -(-n8 // TM)
    if num_tc > 1 and n8 >= 8 * num_tc:
        # Balance the "parallel" row axis across TensorCores (v4/v5p/v7x).
        steps = _round_up(max(steps, num_tc), num_tc)
        TM = _round_up(-(-n8 // steps), 8)
    n_pad = _round_up(n8, TM)

    # --- operand staging --------------------------------------------------------
    # h staged in bf16 once here (halves the dominant input HBM stream); skip
    # math inside the kernel is still f32.
    h_p = h.astype(jnp.bfloat16)
    if n_pad != n:
        h_p = jnp.pad(h_p, ((0, n_pad - n), (0, 0)))

    w3 = params["w3"]
    b3 = params["b3"]
    if c_pad != nclass:
        w3 = jnp.pad(w3, ((0, 0), (0, c_pad - nclass)))
        b3 = jnp.pad(b3, ((0, 0), (0, c_pad - nclass)))

    w1 = params["w1"].astype(jnp.bfloat16)
    w2 = params["w2"].astype(jnp.bfloat16)
    w3 = w3.astype(jnp.bfloat16)
    b1 = params["b1"].astype(jnp.float32)
    b2 = params["b2"].astype(jnp.float32)
    b3 = b3.astype(jnp.float32)

    skips = jnp.stack(
        [params["sw12"], params["sw13"], params["sw23"]]
    ).astype(jnp.float32)                           # [3] -> SMEM scalar prefetch

    # --- VMEM limit --------------------------------------------------------------
    bytes_needed = resident_bytes + TM * per_row
    vmem_limit = int(min(vmem_budget, max(2 * bytes_needed, 32 * 2**20)))

    args = (skips, h_p, w1, b1, w2, b2, w3, b3)
    try:
        out = _build_call(TM, n_pad, hdim, c_pad, vmem_limit,
                          single_buffer_weights=True)(*args)
    except Exception:
        # Fallback: default (double-buffered) resident specs — always valid.
        out = _build_call(TM, n_pad, hdim, c_pad, vmem_limit,
                          single_buffer_weights=False)(*args)

    if n_pad != n or c_pad != nclass:
        out = out[:n, :nclass]
    return out


def init_params(key, hdim, nclass):
    """Deterministic synthetic parameters (shapes match the nn.Linear layers)."""
    ks = jax.random.split(key, 9)
    scale = 1.0 / jnp.sqrt(hdim)
    return {
        # stored as [in, out] (transpose of PyTorch's [out, in])
        "w1": jax.random.uniform(ks[0], (hdim, hdim), jnp.float32, -scale, scale),
        "b1": jax.random.uniform(ks[1], (1, hdim), jnp.float32, -scale, scale),
        "w2": jax.random.uniform(ks[2], (hdim, hdim), jnp.float32, -scale, scale),
        "b2": jax.random.uniform(ks[3], (1, hdim), jnp.float32, -scale, scale),
        "w3": jax.random.uniform(ks[4], (hdim, nclass), jnp.float32, -scale, scale),
        "b3": jax.random.uniform(ks[5], (1, nclass), jnp.float32, -scale, scale),
        # torch.rand(1) -> uniform [0, 1) scalars
        "sw12": jax.random.uniform(ks[6], (), jnp.float32),
        "sw13": jax.random.uniform(ks[7], (), jnp.float32),
        "sw23": jax.random.uniform(ks[8], (), jnp.float32),
    }


def reference_f32(h, p):
    """Pure-JAX f32 reference (matches the PyTorch module's semantics)."""
    sig = jax.nn.sigmoid
    h1 = sig(h @ p["w1"] + p["b1"])
    h2 = sig((h1 + p["sw12"] * h) @ p["w2"] + p["b2"])
    fi = h2 + p["sw13"] * h + p["sw23"] * h1
    return sig(fi @ p["w3"] + p["b3"])


def reference_bf16(h, p):
    """Pure-JAX reference with the kernel's precision (bf16 h/matmuls, f32 acc)."""
    sig = jax.nn.sigmoid
    hb = h.astype(jnp.bfloat16)          # kernel stages h in bf16
    hf = hb.astype(jnp.float32)          # f32 copy used for skip math

    def mm(x, w):
        return jnp.dot(x.astype(jnp.bfloat16), w.astype(jnp.bfloat16),
                       preferred_element_type=jnp.float32)

    h1 = sig(mm(hb, p["w1"]) + p["b1"])
    h2 = sig(mm(h1 + p["sw12"] * hf, p["w2"]) + p["b2"])
    fi = h2 + p["sw13"] * hf + p["sw23"] * h1
    return sig(mm(fi, p["w3"]) + p["b3"])


if __name__ == "__main__":
    key = jax.random.PRNGKey(0)

    # Case 1: tiny shapes implied by the module (N=8, hdim=32, nclass=8).
    # Case 2: larger batch exercising row tiling, resident weights, padding.
    for (N, HDIM, NCLASS) in [(8, 32, 8), (1024, 128, 10)]:
        k_param, k_data = jax.random.split(jax.random.fold_in(key, HDIM))
        params = init_params(k_param, HDIM, NCLASS)
        disease_emb = jax.random.normal(k_data, (N, HDIM), jnp.float32)

        out = jax.block_until_ready(disease_mlp(disease_emb, params))
        assert out.shape == (N, NCLASS)

        ref_bf = reference_bf16(disease_emb, params)
        ref_32 = reference_f32(disease_emb, params)
        assert jnp.allclose(out, ref_bf, atol=2e-3, rtol=2e-3), \
            f"mismatch vs matched-precision reference for shape {(N, HDIM, NCLASS)}"
        assert jnp.allclose(out, ref_32, atol=5e-2, rtol=5e-2), \
            f"mismatch vs f32 reference for shape {(N, HDIM, NCLASS)}"

    print("KERNEL_OK")
</pallas_src>

<mosaic_0001>
module attributes {stable_mosaic.version = 11 : i64} {
  func.func @disease_mlp_kernel(%arg0: i32, %arg1: memref<3xf32, #tpu.memory_space<smem>>, %arg2: memref<8x32xbf16, #tpu.memory_space<vmem>>, %arg3: memref<32x32xbf16, #tpu.memory_space<vmem>>, %arg4: memref<1x32xf32, #tpu.memory_space<vmem>>, %arg5: memref<32x32xbf16, #tpu.memory_space<vmem>>, %arg6: memref<1x32xf32, #tpu.memory_space<vmem>>, %arg7: memref<32x128xbf16, #tpu.memory_space<vmem>>, %arg8: memref<1x128xf32, #tpu.memory_space<vmem>>, %arg9: memref<8x128xf32, #tpu.memory_space<vmem>>) attributes {dimension_semantics = [#tpu.dimension_semantics<parallel>], iteration_bounds = array<i64: 1>, scalar_prefetch = 1 : i64, scratch_operands = 0 : i64, tpu.core_type = #tpu.core_type<tc>, window_params = [{transform_indices = @transform_0, window_bounds = array<i64: 8, 32>}, {pipeline_mode = #tpu.pipeline_mode<synchronous>, transform_indices = @transform_1, window_bounds = array<i64: 32, 32>}, {pipeline_mode = #tpu.pipeline_mode<synchronous>, transform_indices = @transform_2, window_bounds = array<i64: 1, 32>}, {pipeline_mode = #tpu.pipeline_mode<synchronous>, transform_indices = @transform_3, window_bounds = array<i64: 32, 32>}, {pipeline_mode = #tpu.pipeline_mode<synchronous>, transform_indices = @transform_4, window_bounds = array<i64: 1, 32>}, {pipeline_mode = #tpu.pipeline_mode<synchronous>, transform_indices = @transform_5, window_bounds = array<i64: 32, 128>}, {pipeline_mode = #tpu.pipeline_mode<synchronous>, transform_indices = @transform_6, window_bounds = array<i64: 1, 128>}, {transform_indices = @transform_7, window_bounds = array<i64: 8, 128>}]} {
    %c0 = arith.constant 0 : index
    %0 = memref.load %arg1[%c0] : memref<3xf32, #tpu.memory_space<smem>>
    %c1 = arith.constant 1 : index
    %1 = memref.load %arg1[%c1] : memref<3xf32, #tpu.memory_space<smem>>
    %c2 = arith.constant 2 : index
    %2 = memref.load %arg1[%c2] : memref<3xf32, #tpu.memory_space<smem>>
    %c0_0 = arith.constant 0 : index
    %c0_1 = arith.constant 0 : index
    %3 = vector.load %arg2[%c0_0, %c0_1] : memref<8x32xbf16, #tpu.memory_space<vmem>>, vector<8x32xbf16>
    %4 = arith.extf %3 : vector<8x32xbf16> to vector<8x32xf32>
    %c0_2 = arith.constant 0 : index
    %c0_3 = arith.constant 0 : index
    %5 = vector.load %arg3[%c0_2, %c0_3] : memref<32x32xbf16, #tpu.memory_space<vmem>>, vector<32x32xbf16>
    %cst = arith.constant dense<0.000000e+00> : vector<8x32xf32>
    %6 = tpu.matmul %3, %5, %cst {dimension_numbers = #tpu.dot_dimension_numbers<[1], [0], [0], [1], [0, 0, 1, 1], [], []>} : vector<8x32xbf16>, vector<32x32xbf16>, vector<8x32xf32> -> vector<8x32xf32>
    %c0_4 = arith.constant 0 : index
    %c0_5 = arith.constant 0 : index
    %7 = vector.load %arg4[%c0_4, %c0_5] : memref<1x32xf32, #tpu.memory_space<vmem>>, vector<1x32xf32>
    %8 = vector.broadcast %7 : vector<1x32xf32> to vector<8x32xf32>
    %9 = arith.addf %6, %8 : vector<8x32xf32>
    %cst_6 = arith.constant 5.000000e-01 : f32
    %10 = vector.broadcast %cst_6 : f32 to vector<8x32xf32>
    %11 = arith.mulf %10, %9 : vector<8x32xf32>
    %12 = math.tanh %11 : vector<8x32xf32>
    %cst_7 = arith.constant 5.000000e-01 : f32
    %13 = vector.broadcast %cst_7 : f32 to vector<8x32xf32>
    %14 = arith.mulf %13, %12 : vector<8x32xf32>
    %cst_8 = arith.constant 5.000000e-01 : f32
    %15 = vector.broadcast %cst_8 : f32 to vector<8x32xf32>
    %16 = arith.addf %14, %15 : vector<8x32xf32>
    %17 = vector.broadcast %0 : f32 to vector<8x32xf32>
    %18 = arith.mulf %17, %4 : vector<8x32xf32>
    %19 = arith.addf %16, %18 : vector<8x32xf32>
    %20 = arith.truncf %19 : vector<8x32xf32> to vector<8x32xbf16>
    %c0_9 = arith.constant 0 : index
    %c0_10 = arith.constant 0 : index
    %21 = vector.load %arg5[%c0_9, %c0_10] : memref<32x32xbf16, #tpu.memory_space<vmem>>, vector<32x32xbf16>
    %cst_11 = arith.constant dense<0.000000e+00> : vector<8x32xf32>
    %22 = tpu.matmul %20, %21, %cst_11 {dimension_numbers = #tpu.dot_dimension_numbers<[1], [0], [0], [1], [0, 0, 1, 1], [], []>} : vector<8x32xbf16>, vector<32x32xbf16>, vector<8x32xf32> -> vector<8x32xf32>
    %c0_12 = arith.constant 0 : index
    %c0_13 = arith.constant 0 : index
    %23 = vector.load %arg6[%c0_12, %c0_13] : memref<1x32xf32, #tpu.memory_space<vmem>>, vector<1x32xf32>
    %24 = vector.broadcast %23 : vector<1x32xf32> to vector<8x32xf32>
    %25 = arith.addf %22, %24 : vector<8x32xf32>
    %cst_14 = arith.constant 5.000000e-01 : f32
    %26 = vector.broadcast %cst_14 : f32 to vector<8x32xf32>
    %27 = arith.mulf %26, %25 : vector<8x32xf32>
    %28 = math.tanh %27 : vector<8x32xf32>
    %cst_15 = arith.constant 5.000000e-01 : f32
    %29 = vector.broadcast %cst_15 : f32 to vector<8x32xf32>
    %30 = arith.mulf %29, %28 : vector<8x32xf32>
    %cst_16 = arith.constant 5.000000e-01 : f32
    %31 = vector.broadcast %cst_16 : f32 to vector<8x32xf32>
    %32 = arith.addf %30, %31 : vector<8x32xf32>
    %33 = vector.broadcast %1 : f32 to vector<8x32xf32>
    %34 = arith.mulf %33, %4 : vector<8x32xf32>
    %35 = arith.addf %32, %34 : vector<8x32xf32>
    %36 = vector.broadcast %2 : f32 to vector<8x32xf32>
    %37 = arith.mulf %36, %16 : vector<8x32xf32>
    %38 = arith.addf %35, %37 : vector<8x32xf32>
    %39 = arith.truncf %38 : vector<8x32xf32> to vector<8x32xbf16>
    %c0_17 = arith.constant 0 : index
    %c0_18 = arith.constant 0 : index
    %40 = vector.load %arg7[%c0_17, %c0_18] : memref<32x128xbf16, #tpu.memory_space<vmem>>, vector<32x128xbf16>
    %cst_19 = arith.constant dense<0.000000e+00> : vector<8x128xf32>
    %41 = tpu.matmul %39, %40, %cst_19 {dimension_numbers = #tpu.dot_dimension_numbers<[1], [0], [0], [1], [0, 0, 1, 1], [], []>} : vector<8x32xbf16>, vector<32x128xbf16>, vector<8x128xf32> -> vector<8x128xf32>
    %c0_20 = arith.constant 0 : index
    %c0_21 = arith.constant 0 : index
    %42 = vector.load %arg8[%c0_20, %c0_21] : memref<1x128xf32, #tpu.memory_space<vmem>>, vector<1x128xf32>
    %43 = vector.broadcast %42 : vector<1x128xf32> to vector<8x128xf32>
    %44 = arith.addf %41, %43 : vector<8x128xf32>
    %cst_22 = arith.constant 5.000000e-01 : f32
    %45 = vector.broadcast %cst_22 : f32 to vector<8x128xf32>
    %46 = arith.mulf %45, %44 : vector<8x128xf32>
    %47 = math.tanh %46 : vector<8x128xf32>
    %cst_23 = arith.constant 5.000000e-01 : f32
    %48 = vector.broadcast %cst_23 : f32 to vector<8x128xf32>
    %49 = arith.mulf %48, %47 : vector<8x128xf32>
    %cst_24 = arith.constant 5.000000e-01 : f32
    %50 = vector.broadcast %cst_24 : f32 to vector<8x128xf32>
    %51 = arith.addf %49, %50 : vector<8x128xf32>
    %c0_25 = arith.constant 0 : index
    %c0_26 = arith.constant 0 : index
    %52 = vector.load %arg9[%c0_25, %c0_26] : memref<8x128xf32, #tpu.memory_space<vmem>>, vector<8x128xf32>
    tpu.vector_store %arg9[%c0_25, %c0_26], %51 {strides = array<i32>} : memref<8x128xf32, #tpu.memory_space<vmem>>, vector<8x128xf32>,
    return
  }
  func.func @transform_0(%arg0: i32, %arg1: memref<3xf32, #tpu.memory_space<smem>>) -> (i32, i32) {
    %c0_i32 = arith.constant 0 : i32
    %c0_i32_0 = arith.constant 0 : i32
    return %arg0, %c0_i32 : i32, i32
  }
  func.func @transform_1(%arg0: i32, %arg1: memref<3xf32, #tpu.memory_space<smem>>) -> (i32, i32) {
    %c0_i32 = arith.constant 0 : i32
    %c0_i32_0 = arith.constant 0 : i32
    %c0_i32_1 = arith.constant 0 : i32
    return %c0_i32, %c0_i32_0 : i32, i32
  }
  func.func @transform_2(%arg0: i32, %arg1: memref<3xf32, #tpu.memory_space<smem>>) -> (i32, i32) {
    %c0_i32 = arith.constant 0 : i32
    %c0_i32_0 = arith.constant 0 : i32
    %c0_i32_1 = arith.constant 0 : i32
    return %c0_i32, %c0_i32_0 : i32, i32
  }
  func.func @transform_3(%arg0: i32, %arg1: memref<3xf32, #tpu.memory_space<smem>>) -> (i32, i32) {
    %c0_i32 = arith.constant 0 : i32
    %c0_i32_0 = arith.constant 0 : i32
    %c0_i32_1 = arith.constant 0 : i32
    return %c0_i32, %c0_i32_0 : i32, i32
  }
  func.func @transform_4(%arg0: i32, %arg1: memref<3xf32, #tpu.memory_space<smem>>) -> (i32, i32) {
    %c0_i32 = arith.constant 0 : i32
    %c0_i32_0 = arith.constant 0 : i32
    %c0_i32_1 = arith.constant 0 : i32
    return %c0_i32, %c0_i32_0 : i32, i32
  }
  func.func @transform_5(%arg0: i32, %arg1: memref<3xf32, #tpu.memory_space<smem>>) -> (i32, i32) {
    %c0_i32 = arith.constant 0 : i32
    %c0_i32_0 = arith.constant 0 : i32
    %c0_i32_1 = arith.constant 0 : i32
    return %c0_i32, %c0_i32_0 : i32, i32
  }
  func.func @transform_6(%arg0: i32, %arg1: memref<3xf32, #tpu.memory_space<smem>>) -> (i32, i32) {
    %c0_i32 = arith.constant 0 : i32
    %c0_i32_0 = arith.constant 0 : i32
    %c0_i32_1 = arith.constant 0 : i32
    return %c0_i32, %c0_i32_0 : i32, i32
  }
  func.func @transform_7(%arg0: i32, %arg1: memref<3xf32, #tpu.memory_space<smem>>) -> (i32, i32) {
    %c0_i32 = arith.constant 0 : i32
    %c0_i32_0 = arith.constant 0 : i32
    return %arg0, %c0_i32 : i32, i32
  }
}

module attributes {stable_mosaic.version = 11 : i64} {
  func.func @disease_mlp_kernel(%arg0: i32, %arg1: memref<3xf32, #tpu.memory_space<smem>>, %arg2: memref<8x32xbf16, #tpu.memory_space<vmem>>, %arg3: memref<32x32xbf16, #tpu.memory_space<vmem>>, %arg4: memref<1x32xf32, #tpu.memory_space<vmem>>, %arg5: memref<32x32xbf16, #tpu.memory_space<vmem>>, %arg6: memref<1x32xf32, #tpu.memory_space<vmem>>, %arg7: memref<32x128xbf16, #tpu.memory_space<vmem>>, %arg8: memref<1x128xf32, #tpu.memory_space<vmem>>, %arg9: memref<8x128xf32, #tpu.memory_space<vmem>>) attributes {dimension_semantics = [#tpu.dimension_semantics<parallel>], iteration_bounds = array<i64: 1>, scalar_prefetch = 1 : i64, scratch_operands = 0 : i64, tpu.core_type = #tpu.core_type<tc>, window_params = [{transform_indices = @transform_0, window_bounds = array<i64: 8, 32>}, {pipeline_mode = #tpu.pipeline_mode<synchronous>, transform_indices = @transform_1, window_bounds = array<i64: 32, 32>}, {pipeline_mode = #tpu.pipeline_mode<synchronous>, transform_indices = @transform_2, window_bounds = array<i64: 1, 32>}, {pipeline_mode = #tpu.pipeline_mode<synchronous>, transform_indices = @transform_3, window_bounds = array<i64: 32, 32>}, {pipeline_mode = #tpu.pipeline_mode<synchronous>, transform_indices = @transform_4, window_bounds = array<i64: 1, 32>}, {pipeline_mode = #tpu.pipeline_mode<synchronous>, transform_indices = @transform_5, window_bounds = array<i64: 32, 128>}, {pipeline_mode = #tpu.pipeline_mode<synchronous>, transform_indices = @transform_6, window_bounds = array<i64: 1, 128>}, {transform_indices = @transform_7, window_bounds = array<i64: 8, 128>}]} {
    %c0 = arith.constant 0 : index
    %0 = memref.load %arg1[%c0] : memref<3xf32, #tpu.memory_space<smem>>
    %c1 = arith.constant 1 : index
    %1 = memref.load %arg1[%c1] : memref<3xf32, #tpu.memory_space<smem>>
    %c2 = arith.constant 2 : index
    %2 = memref.load %arg1[%c2] : memref<3xf32, #tpu.memory_space<smem>>
    %c0_0 = arith.constant 0 : index
    %c0_1 = arith.constant 0 : index
    %3 = vector.load %arg2[%c0_0, %c0_1] : memref<8x32xbf16, #tpu.memory_space<vmem>>, vector<8x32xbf16>
    %4 = arith.extf %3 : vector<8x32xbf16> to vector<8x32xf32>
    %c0_2 = arith.constant 0 : index
    %c0_3 = arith.constant 0 : index
    %5 = vector.load %arg3[%c0_2, %c0_3] : memref<32x32xbf16, #tpu.memory_space<vmem>>, vector<32x32xbf16>
    %cst = arith.constant dense<0.000000e+00> : vector<8x32xf32>
    %6 = tpu.matmul %3, %5, %cst {dimension_numbers = #tpu.dot_dimension_numbers<[1], [0], [0], [1], [0, 0, 1, 1], [], []>} : vector<8x32xbf16>, vector<32x32xbf16>, vector<8x32xf32> -> vector<8x32xf32>
    %c0_4 = arith.constant 0 : index
    %c0_5 = arith.constant 0 : index
    %7 = vector.load %arg4[%c0_4, %c0_5] : memref<1x32xf32, #tpu.memory_space<vmem>>, vector<1x32xf32>
    %8 = vector.broadcast %7 : vector<1x32xf32> to vector<8x32xf32>
    %9 = arith.addf %6, %8 : vector<8x32xf32>
    %cst_6 = arith.constant 5.000000e-01 : f32
    %10 = vector.broadcast %cst_6 : f32 to vector<8x32xf32>
    %11 = arith.mulf %10, %9 : vector<8x32xf32>
    %12 = math.tanh %11 : vector<8x32xf32>
    %cst_7 = arith.constant 5.000000e-01 : f32
    %13 = vector.broadcast %cst_7 : f32 to vector<8x32xf32>
    %14 = arith.mulf %13, %12 : vector<8x32xf32>
    %cst_8 = arith.constant 5.000000e-01 : f32
    %15 = vector.broadcast %cst_8 : f32 to vector<8x32xf32>
    %16 = arith.addf %14, %15 : vector<8x32xf32>
    %17 = vector.broadcast %0 : f32 to vector<8x32xf32>
    %18 = arith.mulf %17, %4 : vector<8x32xf32>
    %19 = arith.addf %16, %18 : vector<8x32xf32>
    %20 = arith.truncf %19 : vector<8x32xf32> to vector<8x32xbf16>
    %c0_9 = arith.constant 0 : index
    %c0_10 = arith.constant 0 : index
    %21 = vector.load %arg5[%c0_9, %c0_10] : memref<32x32xbf16, #tpu.memory_space<vmem>>, vector<32x32xbf16>
    %cst_11 = arith.constant dense<0.000000e+00> : vector<8x32xf32>
    %22 = tpu.matmul %20, %21, %cst_11 {dimension_numbers = #tpu.dot_dimension_numbers<[1], [0], [0], [1], [0, 0, 1, 1], [], []>} : vector<8x32xbf16>, vector<32x32xbf16>, vector<8x32xf32> -> vector<8x32xf32>
    %c0_12 = arith.constant 0 : index
    %c0_13 = arith.constant 0 : index
    %23 = vector.load %arg6[%c0_12, %c0_13] : memref<1x32xf32, #tpu.memory_space<vmem>>, vector<1x32xf32>
    %24 = vector.broadcast %23 : vector<1x32xf32> to vector<8x32xf32>
    %25 = arith.addf %22, %24 : vector<8x32xf32>
    %cst_14 = arith.constant 5.000000e-01 : f32
    %26 = vector.broadcast %cst_14 : f32 to vector<8x32xf32>
    %27 = arith.mulf %26, %25 : vector<8x32xf32>
    %28 = math.tanh %27 : vector<8x32xf32>
    %cst_15 = arith.constant 5.000000e-01 : f32
    %29 = vector.broadcast %cst_15 : f32 to vector<8x32xf32>
    %30 = arith.mulf %29, %28 : vector<8x32xf32>
    %cst_16 = arith.constant 5.000000e-01 : f32
    %31 = vector.broadcast %cst_16 : f32 to vector<8x32xf32>
    %32 = arith.addf %30, %31 : vector<8x32xf32>
    %33 = vector.broadcast %1 : f32 to vector<8x32xf32>
    %34 = arith.mulf %33, %4 : vector<8x32xf32>
    %35 = arith.addf %32, %34 : vector<8x32xf32>
    %36 = vector.broadcast %2 : f32 to vector<8x32xf32>
    %37 = arith.mulf %36, %16 : vector<8x32xf32>
    %38 = arith.addf %35, %37 : vector<8x32xf32>
    %39 = arith.truncf %38 : vector<8x32xf32> to vector<8x32xbf16>
    %c0_17 = arith.constant 0 : index
    %c0_18 = arith.constant 0 : index
    %40 = vector.load %arg7[%c0_17, %c0_18] : memref<32x128xbf16, #tpu.memory_space<vmem>>, vector<32x128xbf16>
    %cst_19 = arith.constant dense<0.000000e+00> : vector<8x128xf32>
    %41 = tpu.matmul %39, %40, %cst_19 {dimension_numbers = #tpu.dot_dimension_numbers<[1], [0], [0], [1], [0, 0, 1, 1], [], []>} : vector<8x32xbf16>, vector<32x128xbf16>, vector<8x128xf32> -> vector<8x128xf32>
    %c0_20 = arith.constant 0 : index
    %c0_21 = arith.constant 0 : index
    %42 = vector.load %arg8[%c0_20, %c0_21] : memref<1x128xf32, #tpu.memory_space<vmem>>, vector<1x128xf32>
    %43 = vector.broadcast %42 : vector<1x128xf32> to vector<8x128xf32>
    %44 = arith.addf %41, %43 : vector<8x128xf32>
    %cst_22 = arith.constant 5.000000e-01 : f32
    %45 = vector.broadcast %cst_22 : f32 to vector<8x128xf32>
    %46 = arith.mulf %45, %44 : vector<8x128xf32>
    %47 = math.tanh %46 : vector<8x128xf32>
    %cst_23 = arith.constant 5.000000e-01 : f32
    %48 = vector.broadcast %cst_23 : f32 to vector<8x128xf32>
    %49 = arith.mulf %48, %47 : vector<8x128xf32>
    %cst_24 = arith.constant 5.000000e-01 : f32
    %50 = vector.broadcast %cst_24 : f32 to vector<8x128xf32>
    %51 = arith.addf %49, %50 : vector<8x128xf32>
    %c0_25 = arith.constant 0 : index
    %c0_26 = arith.constant 0 : index
    %52 = vector.load %arg9[%c0_25, %c0_26] : memref<8x128xf32, #tpu.memory_space<vmem>>, vector<8x128xf32>
    tpu.vector_store %arg9[%c0_25, %c0_26], %51 {strides = array<i32>} : memref<8x128xf32, #tpu.memory_space<vmem>>, vector<8x128xf32>,
    return
  }
  func.func @transform_0(%arg0: i32, %arg1: memref<3xf32, #tpu.memory_space<smem>>) -> (i32, i32) {
    %c0_i32 = arith.constant 0 : i32
    %c0_i32_0 = arith.constant 0 : i32
    return %arg0, %c0_i32 : i32, i32
  }
  func.func @transform_1(%arg0: i32, %arg1: memref<3xf32, #tpu.memory_space<smem>>) -> (i32, i32) {
    %c0_i32 = arith.constant 0 : i32
    %c0_i32_0 = arith.constant 0 : i32
    %c0_i32_1 = arith.constant 0 : i32
    return %c0_i32, %c0_i32_0 : i32, i32
  }
  func.func @transform_2(%arg0: i32, %arg1: memref<3xf32, #tpu.memory_space<smem>>) -> (i32, i32) {
    %c0_i32 = arith.constant 0 : i32
    %c0_i32_0 = arith.constant 0 : i32
    %c0_i32_1 = arith.constant 0 : i32
    return %c0_i32, %c0_i32_0 : i32, i32
  }
  func.func @transform_3(%arg0: i32, %arg1: memref<3xf32, #tpu.memory_space<smem>>) -> (i32, i32) {
    %c0_i32 = arith.constant 0 : i32
    %c0_i32_0 = arith.constant 0 : i32
    %c0_i32_1 = arith.constant 0 : i32
    return %c0_i32, %c0_i32_0 : i32, i32
  }
  func.func @transform_4(%arg0: i32, %arg1: memref<3xf32, #tpu.memory_space<smem>>) -> (i32, i32) {
    %c0_i32 = arith.constant 0 : i32
    %c0_i32_0 = arith.constant 0 : i32
    %c0_i32_1 = arith.constant 0 : i32
    return %c0_i32, %c0_i32_0 : i32, i32
  }
  func.func @transform_5(%arg0: i32, %arg1: memref<3xf32, #tpu.memory_space<smem>>) -> (i32, i32) {
    %c0_i32 = arith.constant 0 : i32
    %c0_i32_0 = arith.constant 0 : i32
    %c0_i32_1 = arith.constant 0 : i32
    return %c0_i32, %c0_i32_0 : i32, i32
  }
  func.func @transform_6(%arg0: i32, %arg1: memref<3xf32, #tpu.memory_space<smem>>) -> (i32, i32) {
    %c0_i32 = arith.constant 0 : i32
    %c0_i32_0 = arith.constant 0 : i32
    %c0_i32_1 = arith.constant 0 : i32
    return %c0_i32, %c0_i32_0 : i32, i32
  }
  func.func @transform_7(%arg0: i32, %arg1: memref<3xf32, #tpu.memory_space<smem>>) -> (i32, i32) {
    %c0_i32 = arith.constant 0 : i32
    %c0_i32_0 = arith.constant 0 : i32
    return %arg0, %c0_i32 : i32, i32
  }
}

</mosaic_0001>

<bundles_post_ra>
// kernel: tpu_custom_call.1
= control target key start
LH: loop header
LB: loop body
LE: loop exit
PB: predicated region body
PF: predicated region fallthrough
CT: control target
= control target key end

     0   :  { %s518_s27 = smov [#allocation3]   ;;  %s612_s0 = inlined_call_operand.hbm [shape: f32[3], index: 0, kind: input, shape index: {}]   ;;  %s613_s1 = inlined_call_operand.hbm [shape: bf16[8,32], index: 1, kind: input, shape index: {}]   ;;  %s614_s2 = inlined_call_operand.hbm [shape: bf16[32,32], index: 2, kind: input, shape index: {}]   ;;  %s615_s3 = inlined_call_operand.vmem [shape: f32[1,32], index: 3, kind: input, shape index: {}]   ;;  %s616_s4 = inlined_call_operand.hbm [shape: bf16[32,32], index: 4, kind: input, shape index: {}]   ;;  %s617_s5 = inlined_call_operand.vmem [shape: f32[1,32], index: 5, kind: input, shape index: {}]   ;;  %s618_s6 = inlined_call_operand.hbm [shape: bf16[32,128], index: 6, kind: input, shape index: {}]   ;;  %s619_s7 = inlined_call_operand.vmem [shape: f32[1,128], index: 7, kind: input, shape index: {}]   ;;  %s620_s8 = inlined_call_operand.hbm [shape: f32[8,128], index: 8, kind: output, shape index: {}]  }
   0x1   :  { %14 = dma.hbm_to_smem %s612_s0, 16, %s518_s27, [#allocation2] }
   0x2   :  { %508 = dma.done.wait [#allocation2], 16 }
   0x3   :  { %509 = vsyncadd [#allocation2], 4294967280 }
   0x4   :  { %16 = sfence }
   0x5   :  { %17 = vsyncpa [#allocation5], 0 }
   0x6   :  { %18 = vsyncpa [#allocation8], 0 }
   0x7   :  { %19 = vsyncpa [#allocation11], 0 }
   0x8   :  { %20 = vsyncpa [#allocation6], 0  ;;  %s519_s30 = smov [#allocation7]  }
   0x9   :  { %s36_s9 = sshll.u32 %s519_s30, 4  ;;  %s37_s9 = int_to_ptr.vmem [resolvable:$true] %s36_s9 }
   0xa   :  { %s416_s10 = scalar_lea.vmem %s37_s9, 256  ;;  %p421_p1 = scmp.lt.s32.totalorder %s37_s9, %s37_s9 }
   0xb   :  { %p417_p0 = scmp.ne.s32.totalorder %s37_s9, %s416_s10  ;;  %p422_p2 = scmp.lt.s32.totalorder %s416_s10, %s416_s10 }
   0xd   :  { %p423_p3 = por %p422_p2, %p421_p1 }
   0xf   :  { %p424_p4 = pnand %p423_p3, %p417_p0 }
  0x11   :  { %427 = shalt.err (!%p424_p4)
}
  0x12   :  { %s520_s11 = smov 64   ;;  %s521_s12 = smov 4  }
  0x13   :  { %42 = dma.hbm_to_vmem [thread:$0]  %s614_s2, 256, %s37_s9, [#allocation8], %s520_s11, %s520_s11, %s521_s12  }
  0x14   :  { %s522_s14 = smov [#allocation4]   ;;  %s523_s16 = smov [#allocation9]  }
  0x15   :  { %s27_s15 = sshll.u32 %s522_s14, 4  ;;  %s50_s17 = sshll.u32 %s523_s16, 4  ;;  %s28_s15 = int_to_ptr.vmem [resolvable:$true] %s27_s15  ;;  %s51_s17 = int_to_ptr.vmem [resolvable:$true] %s50_s17 }
  0x16   :  { %s436_s18 = scalar_lea.vmem %s28_s15, 64  ;;  %p441_p6 = scmp.lt.s32.totalorder %s28_s15, %s28_s15 }
  0x17   :  { %p437_p5 = scmp.ne.s32.totalorder %s28_s15, %s436_s18  ;;  %p442_p7 = scmp.lt.s32.totalorder %s436_s18, %s436_s18 }
  0x19   :  { %p443_p8 = por %p442_p7, %p441_p6 }
  0x1b   :  { %p444_p9 = pnand %p443_p8, %p437_p5 }
  0x1d   :  { %447 = shalt.err (!%p444_p9)
}
  0x1e   :  { %30 = dma.hbm_to_vmem [thread:$0]  %s613_s1, 64, %s28_s15, [#allocation5]  }
  0x1f   :  { %s456_s21 = scalar_lea.vmem %s51_s17, 256  ;;  %p461_p11 = scmp.lt.s32.totalorder %s51_s17, %s51_s17 }
  0x20   :  { %p457_p10 = scmp.ne.s32.totalorder %s51_s17, %s456_s21  ;;  %p462_p12 = scmp.lt.s32.totalorder %s456_s21, %s456_s21 }
  0x22   :  { %p463_p13 = por %p462_p12, %p461_p11 }
  0x24   :  { %p464_p0 = pnand %p463_p13, %p457_p10 }
  0x26   :  { %467 = shalt.err (!%p464_p0)
}
  0x27   :  { %56 = dma.hbm_to_vmem [thread:$0]  %s616_s4, 256, %s51_s17, [#allocation8], %s520_s11, %s520_s11, %s521_s12  }
  0x28   :  { %s524_s23 = smov [#allocation10]  }
  0x29   :  { %s64_s24 = sshll.u32 %s524_s23, 4  ;;  %s65_s24 = int_to_ptr.vmem [resolvable:$true] %s64_s24 }
  0x2a   :  { %s476_s25 = scalar_lea.vmem %s65_s24, 256  ;;  %p481_p2 = scmp.lt.s32.totalorder %s65_s24, %s65_s24 }
  0x2b   :  { %p477_p1 = scmp.ne.s32.totalorder %s65_s24, %s476_s25  ;;  %p482_p3 = scmp.lt.s32.totalorder %s476_s25, %s476_s25 }
  0x2d   :  { %p483_p4 = por %p482_p3, %p481_p2 }
  0x2f   :  { %p484_p5 = pnand %p483_p4, %p477_p1 }
  0x31   :  { %487 = shalt.err (!%p484_p5)
}
  0x32   :  { %70 = dma.hbm_to_vmem [thread:$0]  %s618_s6, 256, %s65_s24, [#allocation11], %s520_s11, %s520_s11, %s521_s12  }
  0x33   :  { %510 = dma.done.wait [#allocation5], 64  }
  0x34   :  { %511 = vsyncadd [#allocation5], 4294967232 }
  0x35   :  { %512 = dma.done.wait [#allocation8], 512  }
  0x36   :  { %513 = vsyncadd [#allocation8], 4294966784 }
  0x37   :  { %514 = dma.done.wait [#allocation11], 256  }
  0x38   :  { %515 = vsyncadd [#allocation11], 4294967040  ;;  %v525_v0 = vmov 0.0   ;;  %vm526_vm0 = vmmov 0   ;;  %v388_v1 = vld [vmem:[#allocation7 + $0x8] sm:$0xff]   ;;  %v389_v2 = vld [vmem:[#allocation7] sm:$0xff]  }
  0x39   :  { %354 = vmatprep.subr.bf16.mxu0 %v525_v0  ;;  %358 = vmatprep.mubr.msk.bf16.mxu0 %vm526_vm0, %v525_v0  ;;  %v89_v3 = vld [vmem:[#allocation4] sm:$0xf]  ;;  %vm114_vm1 = vcmask 261120   ;;  %v391_v5 = vld [vmem:[#allocation9] sm:$0xff]   ;;  %s86_s27 = sld [smem:[#allocation3]]  ;;  %v392_v21 = vld [vmem:[#allocation10 + $0x8] sm:$0xff]  }
  0x3a   :  { %362 = vmatprep.subr.bf16.mxu1 %v525_v0  ;;  %366 = vmatprep.mubr.msk.bf16.mxu1 %vm526_vm0, %v525_v0  ;;  %v390_v4 = vld [vmem:[#allocation9 + $0x8] sm:$0xff]   ;;  %v90_v13 = vunpack.c.l.bf16 %v89_v3  ;;  %v393_v22 = vld [vmem:[#allocation10] sm:$0xff]   ;;  %s331_s29 = sld [smem:[#allocation3 + $0x1]]  ;;  %s527_s10 = smov [#allocation12]  }
  0x3b   :  { %355 = vmatpush3.bf16.msra.mxu0 %v388_v1  ;;  %363 = vmatpush3.bf16.msra.mxu1 %v390_v4  ;;  %v333_v6 = vld [vmem:[%s615_s3] ss:$0 sm:$0xff]  ;;  %s332_s30 = sld [smem:[#allocation3 + $0x2]]  ;;  %s320_s11 = sshll.u32 %s527_s10, 4  ;;  %s321_s11 = int_to_ptr.vmem [resolvable:$true] %s320_s11 }
  0x3c   :  { %356 = vmatprep.subr.bf16.mxu0 %v525_v0  ;;  %364 = vmatprep.subr.bf16.mxu1 %v525_v0  ;;  %v337_v23 = vld [vmem:[%s617_s5] ss:$0 sm:$0xff]  ;;  %s488_s12 = scalar_lea.vmem %s321_s11, 128  ;;  %p493_p7 = scmp.lt.s32.totalorder %s321_s11, %s321_s11 }
  0x3d   :  { %v341_v40 = vld [vmem:[%s619_s7] ss:$0 sm:$0xff]  ;;  %p489_p6 = scmp.ne.s32.totalorder %s321_s11, %s488_s12  ;;  %p494_p8 = scmp.lt.s32.totalorder %s488_s12, %s488_s12 }
  0x3f   :  { %357 = vmatpush3.bf16.msra.mxu0 %v389_v2  ;;  %365 = vmatpush3.bf16.msra.mxu1 %v391_v5  ;;  %v162_v14 = vstv %s86_s27  ;;  %p495_p9 = por %p494_p8, %p493_p7 }
  0x40   :  { %370 = vmatprep.subr.bf16.mxu0 %v525_v0  ;;  %v163_v16 = vmul.f32 %v162_v14, %v90_v13  ;;  %v236_v30 = vstv %s331_s29 }
  0x41   :  { %v237_v32 = vmul.f32 %v236_v30, %v90_v13  ;;  %v239_v34 = vstv %s332_s30  ;;  %p496_p10 = pnand %p495_p9, %p489_p6 }
  0x42   :  { %359 = vmatmul.mubr.msk.bf16.vlgmr.msra.gmra.mxu0 %vm114_vm1, %v89_v3 }
  0x43   :  { %374 = vmatprep.mubr.msk.bf16.mxu0 %vm526_vm0, %v525_v0  ;;  %371 = vmatpush3.bf16.msra.mxu0 %v392_v21 }
  0x44   :  { %372 = vmatprep.subr.bf16.mxu0 %v525_v0 }
  0x47   :  { %373 = vmatpush3.bf16.msra.mxu0 %v393_v22 }
 0x102   :  { %v152_v7 = vpop.f32.mrf.mxu0 }
 0x103   :  { %v153_v8 = vadd.f32 %v333_v6, %v152_v7 }
 0x104   :  { %v360_v9 = vpop.f32.mrf.mxu0 }
 0x105   :  { %v158_v10 = vmul.f32 0.5, %v153_v8 }
 0x106   :  { %v155_v11 = vpop.f32.mrf.mxu0 }
 0x107   :  { %394 = vtanh.f32 %v158_v10 }
 0x108   :  { %v361_v12 = vpop.f32.mrf.mxu0 }
 0x114   :  { %v395_v15 = vpop.eup %394 }
 0x115   :  { %v160_v17 = vmul.f32 0.5, %v395_v15 }
 0x117   :  { %v161_v18 = vadd.f32 0.5, %v160_v17 }
 0x119   :  { %v164_v19 = vadd.f32 %v163_v16, %v161_v18  ;;  %v240_v36 = vmul.f32 %v239_v34, %v161_v18 }
 0x11b   :  { %v165_v20 = vpack.c.bf16 %v164_v19, %v164_v19 }
 0x11d   :  { %367 = vmatmul.mubr.msk.bf16.vlgmr.msra.gmra.mxu1 %vm114_vm1, %v165_v20 }
 0x1dd   :  { %v226_v24 = vpop.f32.mrf.mxu1 }
 0x1de   :  { %v227_v25 = vadd.f32 %v337_v23, %v226_v24 }
 0x1df   :  { %v368_v26 = vpop.f32.mrf.mxu1 }
 0x1e0   :  { %v232_v27 = vmul.f32 0.5, %v227_v25 }
 0x1e1   :  { %v229_v28 = vpop.f32.mrf.mxu1 }
 0x1e2   :  { %396 = vtanh.f32 %v232_v27 }
 0x1e3   :  { %v369_v29 = vpop.f32.mrf.mxu1 }
 0x1ef   :  { %v397_v31 = vpop.eup %396 }
 0x1f0   :  { %v234_v33 = vmul.f32 0.5, %v397_v31 }
 0x1f2   :  { %v235_v35 = vadd.f32 0.5, %v234_v33 }
 0x1f4   :  { %v238_v37 = vadd.f32 %v237_v32, %v235_v35 }
 0x1f6   :  { %v241_v38 = vadd.f32 %v240_v36, %v238_v37 }
 0x1f8   :  { %v242_v39 = vpack.c.bf16 %v241_v38, %v241_v38 }
 0x1fa   :  { %375 = vmatmul.mubr.msk.bf16.vlgmr.msra.gmra.mxu0 %vm114_vm1, %v242_v39 }
 0x2ba   :  { %v303_v41 = vpop.f32.mrf.mxu0 }
 0x2bb   :  { %v304_v42 = vadd.f32 %v341_v40, %v303_v41 }
 0x2bc   :  { %v376_v43 = vpop.f32.mrf.mxu0 }
 0x2bd   :  { %v309_v44 = vmul.f32 0.5, %v304_v42 }
 0x2be   :  { %v306_v45 = vpop.f32.mrf.mxu0 }
 0x2bf   :  { %398 = vtanh.f32 %v309_v44 }
 0x2c0   :  { %v377_v46 = vpop.f32.mrf.mxu0 }
 0x2cc   :  { %v399_v47 = vpop.eup %398 }
 0x2cd   :  { %v311_v48 = vmul.f32 0.5, %v399_v47 }
 0x2cf   :  { %v312_v49 = vadd.f32 0.5, %v311_v48 }
 0x2d1   :  { %313 = vst [vmem:[#allocation12] sm:$0xff] %v312_v49 }
 0x2d2   :  { %499 = shalt.err (!%p496_p10)
}
 0x2d3   :  { %323 = dma.vmem_to_hbm [thread:$0]  %s321_s11, 128, %s620_s8, [#allocation6]  }
 0x2d4   :  { %516 = dma.done.wait [#allocation6], 128  }
 0x2d5   :  { %517 = vsyncadd [#allocation6], 4294967168 }
 0x2d6   :  { %327 = vsyncpa [#allocation5], 1 }
 0x2d7   :  { %328 = vsyncpa [#allocation8], 1 }
 0x2d8   :  { %329 = vsyncpa [#allocation11], 1 }
 0x2d9   :  { %330 = vsyncpa [#allocation6], 1 }

// kernel: tpu_custom_call.1
= control target key start
LH: loop header
LB: loop body
LE: loop exit
PB: predicated region body
PF: predicated region fallthrough
CT: control target
= control target key end

     0   :  { %s518_s27 = smov [#allocation3]   ;;  %s612_s0 = inlined_call_operand.hbm [shape: f32[3], index: 0, kind: input, shape index: {}]   ;;  %s613_s1 = inlined_call_operand.hbm [shape: bf16[8,32], index: 1, kind: input, shape index: {}]   ;;  %s614_s2 = inlined_call_operand.hbm [shape: bf16[32,32], index: 2, kind: input, shape index: {}]   ;;  %s615_s3 = inlined_call_operand.vmem [shape: f32[1,32], index: 3, kind: input, shape index: {}]   ;;  %s616_s4 = inlined_call_operand.hbm [shape: bf16[32,32], index: 4, kind: input, shape index: {}]   ;;  %s617_s5 = inlined_call_operand.vmem [shape: f32[1,32], index: 5, kind: input, shape index: {}]   ;;  %s618_s6 = inlined_call_operand.hbm [shape: bf16[32,128], index: 6, kind: input, shape index: {}]   ;;  %s619_s7 = inlined_call_operand.vmem [shape: f32[1,128], index: 7, kind: input, shape index: {}]   ;;  %s620_s8 = inlined_call_operand.hbm [shape: f32[8,128], index: 8, kind: output, shape index: {}]  }
   0x1   :  { %14 = dma.hbm_to_smem %s612_s0, 16, %s518_s27, [#allocation2] }
   0x2   :  { %508 = dma.done.wait [#allocation2], 16 }
   0x3   :  { %509 = vsyncadd [#allocation2], 4294967280 }
   0x4   :  { %16 = sfence }
   0x5   :  { %17 = vsyncpa [#allocation5], 0 }
   0x6   :  { %18 = vsyncpa [#allocation8], 0 }
   0x7   :  { %19 = vsyncpa [#allocation11], 0 }
   0x8   :  { %20 = vsyncpa [#allocation6], 0  ;;  %s519_s30 = smov [#allocation7]  }
   0x9   :  { %s36_s9 = sshll.u32 %s519_s30, 4  ;;  %s37_s9 = int_to_ptr.vmem [resolvable:$true] %s36_s9 }
   0xa   :  { %s416_s10 = scalar_lea.vmem %s37_s9, 256  ;;  %p421_p1 = scmp.lt.s32.totalorder %s37_s9, %s37_s9 }
   0xb   :  { %p417_p0 = scmp.ne.s32.totalorder %s37_s9, %s416_s10  ;;  %p422_p2 = scmp.lt.s32.totalorder %s416_s10, %s416_s10 }
   0xd   :  { %p423_p3 = por %p422_p2, %p421_p1 }
   0xf   :  { %p424_p4 = pnand %p423_p3, %p417_p0 }
  0x11   :  { %427 = shalt.err (!%p424_p4)
}
  0x12   :  { %s520_s11 = smov 64   ;;  %s521_s12 = smov 4  }
  0x13   :  { %42 = dma.hbm_to_vmem [thread:$0]  %s614_s2, 256, %s37_s9, [#allocation8], %s520_s11, %s520_s11, %s521_s12  }
  0x14   :  { %s522_s14 = smov [#allocation4]   ;;  %s523_s16 = smov [#allocation9]  }
  0x15   :  { %s27_s15 = sshll.u32 %s522_s14, 4  ;;  %s50_s17 = sshll.u32 %s523_s16, 4  ;;  %s28_s15 = int_to_ptr.vmem [resolvable:$true] %s27_s15  ;;  %s51_s17 = int_to_ptr.vmem [resolvable:$true] %s50_s17 }
  0x16   :  { %s436_s18 = scalar_lea.vmem %s28_s15, 64  ;;  %p441_p6 = scmp.lt.s32.totalorder %s28_s15, %s28_s15 }
  0x17   :  { %p437_p5 = scmp.ne.s32.totalorder %s28_s15, %s436_s18  ;;  %p442_p7 = scmp.lt.s32.totalorder %s436_s18, %s436_s18 }
  0x19   :  { %p443_p8 = por %p442_p7, %p441_p6 }
  0x1b   :  { %p444_p9 = pnand %p443_p8, %p437_p5 }
  0x1d   :  { %447 = shalt.err (!%p444_p9)
}
  0x1e   :  { %30 = dma.hbm_to_vmem [thread:$0]  %s613_s1, 64, %s28_s15, [#allocation5]  }
  0x1f   :  { %s456_s21 = scalar_lea.vmem %s51_s17, 256  ;;  %p461_p11 = scmp.lt.s32.totalorder %s51_s17, %s51_s17 }
  0x20   :  { %p457_p10 = scmp.ne.s32.totalorder %s51_s17, %s456_s21  ;;  %p462_p12 = scmp.lt.s32.totalorder %s456_s21, %s456_s21 }
  0x22   :  { %p463_p13 = por %p462_p12, %p461_p11 }
  0x24   :  { %p464_p0 = pnand %p463_p13, %p457_p10 }
  0x26   :  { %467 = shalt.err (!%p464_p0)
}
  0x27   :  { %56 = dma.hbm_to_vmem [thread:$0]  %s616_s4, 256, %s51_s17, [#allocation8], %s520_s11, %s520_s11, %s521_s12  }
  0x28   :  { %s524_s23 = smov [#allocation10]  }
  0x29   :  { %s64_s24 = sshll.u32 %s524_s23, 4  ;;  %s65_s24 = int_to_ptr.vmem [resolvable:$true] %s64_s24 }
  0x2a   :  { %s476_s25 = scalar_lea.vmem %s65_s24, 256  ;;  %p481_p2 = scmp.lt.s32.totalorder %s65_s24, %s65_s24 }
  0x2b   :  { %p477_p1 = scmp.ne.s32.totalorder %s65_s24, %s476_s25  ;;  %p482_p3 = scmp.lt.s32.totalorder %s476_s25, %s476_s25 }
  0x2d   :  { %p483_p4 = por %p482_p3, %p481_p2 }
  0x2f   :  { %p484_p5 = pnand %p483_p4, %p477_p1 }
  0x31   :  { %487 = shalt.err (!%p484_p5)
}
  0x32   :  { %70 = dma.hbm_to_vmem [thread:$0]  %s618_s6, 256, %s65_s24, [#allocation11], %s520_s11, %s520_s11, %s521_s12  }
  0x33   :  { %510 = dma.done.wait [#allocation5], 64  }
  0x34   :  { %511 = vsyncadd [#allocation5], 4294967232 }
  0x35   :  { %512 = dma.done.wait [#allocation8], 512  }
  0x36   :  { %513 = vsyncadd [#allocation8], 4294966784 }
  0x37   :  { %514 = dma.done.wait [#allocation11], 256  }
  0x38   :  { %515 = vsyncadd [#allocation11], 4294967040  ;;  %v525_v0 = vmov 0.0   ;;  %vm526_vm0 = vmmov 0   ;;  %v388_v1 = vld [vmem:[#allocation7 + $0x8] sm:$0xff]   ;;  %v389_v2 = vld [vmem:[#allocation7] sm:$0xff]  }
  0x39   :  { %354 = vmatprep.subr.bf16.mxu0 %v525_v0  ;;  %358 = vmatprep.mubr.msk.bf16.mxu0 %vm526_vm0, %v525_v0  ;;  %v89_v3 = vld [vmem:[#allocation4] sm:$0xf]  ;;  %vm114_vm1 = vcmask 261120   ;;  %v391_v5 = vld [vmem:[#allocation9] sm:$0xff]   ;;  %s86_s27 = sld [smem:[#allocation3]]  ;;  %v392_v21 = vld [vmem:[#allocation10 + $0x8] sm:$0xff]  }
  0x3a   :  { %362 = vmatprep.subr.bf16.mxu1 %v525_v0  ;;  %366 = vmatprep.mubr.msk.bf16.mxu1 %vm526_vm0, %v525_v0  ;;  %v390_v4 = vld [vmem:[#allocation9 + $0x8] sm:$0xff]   ;;  %v90_v13 = vunpack.c.l.bf16 %v89_v3  ;;  %v393_v22 = vld [vmem:[#allocation10] sm:$0xff]   ;;  %s331_s29 = sld [smem:[#allocation3 + $0x1]]  ;;  %s527_s10 = smov [#allocation12]  }
  0x3b   :  { %355 = vmatpush3.bf16.msra.mxu0 %v388_v1  ;;  %363 = vmatpush3.bf16.msra.mxu1 %v390_v4  ;;  %v333_v6 = vld [vmem:[%s615_s3] ss:$0 sm:$0xff]  ;;  %s332_s30 = sld [smem:[#allocation3 + $0x2]]  ;;  %s320_s11 = sshll.u32 %s527_s10, 4  ;;  %s321_s11 = int_to_ptr.vmem [resolvable:$true] %s320_s11 }
  0x3c   :  { %356 = vmatprep.subr.bf16.mxu0 %v525_v0  ;;  %364 = vmatprep.subr.bf16.mxu1 %v525_v0  ;;  %v337_v23 = vld [vmem:[%s617_s5] ss:$0 sm:$0xff]  ;;  %s488_s12 = scalar_lea.vmem %s321_s11, 128  ;;  %p493_p7 = scmp.lt.s32.totalorder %s321_s11, %s321_s11 }
  0x3d   :  { %v341_v40 = vld [vmem:[%s619_s7] ss:$0 sm:$0xff]  ;;  %p489_p6 = scmp.ne.s32.totalorder %s321_s11, %s488_s12  ;;  %p494_p8 = scmp.lt.s32.totalorder %s488_s12, %s488_s12 }
  0x3f   :  { %357 = vmatpush3.bf16.msra.mxu0 %v389_v2  ;;  %365 = vmatpush3.bf16.msra.mxu1 %v391_v5  ;;  %v162_v14 = vstv %s86_s27  ;;  %p495_p9 = por %p494_p8, %p493_p7 }
  0x40   :  { %370 = vmatprep.subr.bf16.mxu0 %v525_v0  ;;  %v163_v16 = vmul.f32 %v162_v14, %v90_v13  ;;  %v236_v30 = vstv %s331_s29 }
  0x41   :  { %v237_v32 = vmul.f32 %v236_v30, %v90_v13  ;;  %v239_v34 = vstv %s332_s30  ;;  %p496_p10 = pnand %p495_p9, %p489_p6 }
  0x42   :  { %359 = vmatmul.mubr.msk.bf16.vlgmr.msra.gmra.mxu0 %vm114_vm1, %v89_v3 }
  0x43   :  { %374 = vmatprep.mubr.msk.bf16.mxu0 %vm526_vm0, %v525_v0  ;;  %371 = vmatpush3.bf16.msra.mxu0 %v392_v21 }
  0x44   :  { %372 = vmatprep.subr.bf16.mxu0 %v525_v0 }
  0x47   :  { %373 = vmatpush3.bf16.msra.mxu0 %v393_v22 }
 0x102   :  { %v152_v7 = vpop.f32.mrf.mxu0 }
 0x103   :  { %v153_v8 = vadd.f32 %v333_v6, %v152_v7 }
 0x104   :  { %v360_v9 = vpop.f32.mrf.mxu0 }
 0x105   :  { %v158_v10 = vmul.f32 0.5, %v153_v8 }
 0x106   :  { %v155_v11 = vpop.f32.mrf.mxu0 }
 0x107   :  { %394 = vtanh.f32 %v158_v10 }
 0x108   :  { %v361_v12 = vpop.f32.mrf.mxu0 }
 0x114   :  { %v395_v15 = vpop.eup %394 }
 0x115   :  { %v160_v17 = vmul.f32 0.5, %v395_v15 }
 0x117   :  { %v161_v18 = vadd.f32 0.5, %v160_v17 }
 0x119   :  { %v164_v19 = vadd.f32 %v163_v16, %v161_v18  ;;  %v240_v36 = vmul.f32 %v239_v34, %v161_v18 }
 0x11b   :  { %v165_v20 = vpack.c.bf16 %v164_v19, %v164_v19 }
 0x11d   :  { %367 = vmatmul.mubr.msk.bf16.vlgmr.msra.gmra.mxu1 %vm114_vm1, %v165_v20 }
 0x1dd   :  { %v226_v24 = vpop.f32.mrf.mxu1 }
 0x1de   :  { %v227_v25 = vadd.f32 %v337_v23, %v226_v24 }
 0x1df   :  { %v368_v26 = vpop.f32.mrf.mxu1 }
 0x1e0   :  { %v232_v27 = vmul.f32 0.5, %v227_v25 }
 0x1e1   :  { %v229_v28 = vpop.f32.mrf.mxu1 }
 0x1e2   :  { %396 = vtanh.f32 %v232_v27 }
 0x1e3   :  { %v369_v29 = vpop.f32.mrf.mxu1 }
 0x1ef   :  { %v397_v31 = vpop.eup %396 }
 0x1f0   :  { %v234_v33 = vmul.f32 0.5, %v397_v31 }
 0x1f2   :  { %v235_v35 = vadd.f32 0.5, %v234_v33 }
 0x1f4   :  { %v238_v37 = vadd.f32 %v237_v32, %v235_v35 }
 0x1f6   :  { %v241_v38 = vadd.f32 %v240_v36, %v238_v37 }
 0x1f8   :  { %v242_v39 = vpack.c.bf16 %v241_v38, %v241_v38 }
 0x1fa   :  { %375 = vmatmul.mubr.msk.bf16.vlgmr.msra.gmra.mxu0 %vm114_vm1, %v242_v39 }
 0x2ba   :  { %v303_v41 = vpop.f32.mrf.mxu0 }
 0x2bb   :  { %v304_v42 = vadd.f32 %v341_v40, %v303_v41 }
 0x2bc   :  { %v376_v43 = vpop.f32.mrf.mxu0 }
 0x2bd   :  { %v309_v44 = vmul.f32 0.5, %v304_v42 }
 0x2be   :  { %v306_v45 = vpop.f32.mrf.mxu0 }
 0x2bf   :  { %398 = vtanh.f32 %v309_v44 }
 0x2c0   :  { %v377_v46 = vpop.f32.mrf.mxu0 }
 0x2cc   :  { %v399_v47 = vpop.eup %398 }
 0x2cd   :  { %v311_v48 = vmul.f32 0.5, %v399_v47 }
 0x2cf   :  { %v312_v49 = vadd.f32 0.5, %v311_v48 }
 0x2d1   :  { %313 = vst [vmem:[#allocation12] sm:$0xff] %v312_v49 }
 0x2d2   :  { %499 = shalt.err (!%p496_p10)
}
 0x2d3   :  { %323 = dma.vmem_to_hbm [thread:$0]  %s321_s11, 128, %s620_s8, [#allocation6]  }
 0x2d4   :  { %516 = dma.done.wait [#allocation6], 128  }
 0x2d5   :  { %517 = vsyncadd [#allocation6], 4294967168 }
 0x2d6   :  { %327 = vsyncpa [#allocation5], 1 }
 0x2d7   :  { %328 = vsyncpa [#allocation8], 1 }
 0x2d8   :  { %329 = vsyncpa [#allocation11], 1 }
 0x2d9   :  { %330 = vsyncpa [#allocation6], 1 }

</bundles_post_ra>
